<compile_context>
chip_gen: v5e
topology: v5e:2x2
jax: 0.10.0
libtpu: 0.0.40
codegen_flags: <defaults>
</compile_context>

<pallas_src>
import functools

import jax
import jax.numpy as jnp
from jax.experimental import pallas as pl
from jax.experimental.pallas import tpu as pltpu

FEAT = 128        # per-frame feature channels (fixed by TouchNet: Conv2d(128*nFrames, 128, 1))
TAPS = 9          # 3x3 conv taps
TAPS_PAD = 16     # tap axis padded to a bf16-tile-aligned contraction dim; col 9 = bias tap
LANES = 128       # lane width; head output padded to this for lane-dense stores


# ----------------------------------------------------------------------------
# Fused kernel: 3x3 conv (+bias) + ReLU + avgpool + folded (1x1 conv @ classifier)
#               for TB batch elements per grid step.
# ----------------------------------------------------------------------------
def _touchnet_kernel(p_ref, w1_ref, wcl_ref, bcl_ref, o_ref, *, TB, F, H, W):
    # p_ref  : (TB, F*H*W, TAPS_PAD) bf16  im2col patches; col 9 = 1.0 (bias), 10..15 = 0
    # w1_ref : (TAPS_PAD, FEAT)      bf16  conv taps (dy-major/dx-minor); row 9 = conv bias
    # wcl_ref: (F*FEAT, LANES-pad)   f32   combination conv folded with classifier
    # bcl_ref: (1, LANES-pad)        f32   folded bias
    # o_ref  : (TB, 1, LANES-pad)    f32   padded logits for these TB batch elements
    HW = H * W
    M = TB * F * HW

    # SmallNet stand-in: 3x3 conv (1 -> 128) + bias for all TB*F frames as ONE MXU matmul.
    patches = p_ref[...].reshape(M, TAPS_PAD)
    y = jnp.dot(patches, w1_ref[...], preferred_element_type=jnp.float32)   # (M, FEAT) f32
    y = jnp.maximum(y, 0.0)                                                  # ReLU
    # nn.Threshold(-1e20, -1e20) is a no-op after ReLU -> removed.

    # AdaptiveAvgPool2d(1) per (element, frame); pooling commutes with the linear head,
    # so the folded (combination @ classifier) weight is applied to pooled features only.
    y4 = y.reshape(TB, F, HW, FEAT)
    inv_hw = jnp.float32(1.0 / HW)
    pooled = [jnp.sum(y4[:, f], axis=1) * inv_hw for f in range(F)]          # F x (TB, FEAT)
    pooled_cat = jnp.concatenate(pooled, axis=-1)                            # (TB, F*FEAT)

    # Single head contraction: (TB, F*128) @ (F*128, CPAD) on the MXU.
    logits = jnp.dot(pooled_cat, wcl_ref[...], preferred_element_type=jnp.float32)
    o_ref[:, 0, :] = logits + bcl_ref[...]


# ----------------------------------------------------------------------------
# Wrapper-side layout plumbing
# ----------------------------------------------------------------------------
def _im2col(x):
    """(B, F, H, W) -> (B, F*H*W, TAPS_PAD) bf16 patch matrix.

    Taps 0..8: 3x3 neighborhood (dy-major / dx-minor, zero padding folded in).
    Tap 9    : constant 1.0 (carries the conv bias via the tap matmul).
    Taps 10..15: zero (tile alignment of the contraction dim)."""
    B, F, H, W = x.shape
    xp = jnp.pad(x.astype(jnp.float32), ((0, 0), (0, 0), (1, 1), (1, 1)))
    cols = [xp[:, :, dy:dy + H, dx:dx + W] for dy in range(3) for dx in range(3)]
    cols.append(jnp.ones_like(cols[0]))                            # bias tap
    p = jnp.stack(cols, axis=-1)                                   # (B, F, H, W, 10)
    p = jnp.pad(p, ((0, 0),) * 4 + ((0, TAPS_PAD - TAPS - 1),))    # -> (B, F, H, W, 16)
    return p.reshape(B, F * H * W, TAPS_PAD).astype(jnp.bfloat16)


def prepare_params(params):
    """One-time weight preparation (hoisted out of the jitted forward)."""
    w1, b1 = params["w1"], params["b1"]
    # Conv taps + bias row + zero rows -> (TAPS_PAD, FEAT), bf16 to halve the weight DMA.
    w1p = jnp.concatenate(
        [w1, b1, jnp.zeros((TAPS_PAD - TAPS - 1, FEAT), w1.dtype)], axis=0
    ).astype(jnp.bfloat16)
    # Fold the classifier into the 1x1 combination conv (both linear, after pooling).
    wcl = params["wc"] @ params["wl"]                          # (F*FEAT, C)
    bcl = params["bc"] @ params["wl"] + params["bl"]           # (1, C)
    C = wcl.shape[-1]
    cpad = ((C + LANES - 1) // LANES) * LANES                  # lane-dense head / output
    wcl = jnp.pad(wcl, ((0, 0), (0, cpad - C))).astype(jnp.float32)
    bcl = jnp.pad(bcl, ((0, 0), (0, cpad - C))).astype(jnp.float32)
    return dict(w1p=w1p, wcl=wcl, bcl=bcl)


def _pick_tb(B, F, H, W):
    """Batch tile: biggest divisor of B that keeps >=2 grid steps (v7x megacore) and
    keeps double-buffered bf16 patches well under the v7x 32 MiB scoped-VMEM default."""
    per_elem = F * H * W * TAPS_PAD * 2            # bf16 patch bytes per batch element
    budget = 8 * 1024 * 1024                       # conservative; weights add < 256 KiB
    cap = max(1, budget // (2 * per_elem))         # x2 for the pipeline's double buffer
    limit = min(cap, max(1, B // 2))
    best = 1
    for d in range(1, B + 1):
        if B % d == 0 and d <= limit:
            best = d
    return best


@functools.partial(jax.jit, static_argnames=("num_classes",))
def touchnet_forward(x, prep, *, num_classes):
    B, F, H, W = x.shape
    cpad = prep["wcl"].shape[-1]
    TB = _pick_tb(B, F, H, W)

    patches = _im2col(x)                                           # (B, F*H*W, 16) bf16

    out = pl.pallas_call(
        functools.partial(_touchnet_kernel, TB=TB, F=F, H=H, W=W),
        out_shape=jax.ShapeDtypeStruct((B, 1, cpad), jnp.float32),
        grid=(B // TB,),
        in_specs=[
            pl.BlockSpec((TB, F * H * W, TAPS_PAD), lambda b: (b, 0, 0)),
            pl.BlockSpec((TAPS_PAD, FEAT), lambda b: (0, 0)),      # VMEM-resident weights
            pl.BlockSpec((F * FEAT, cpad), lambda b: (0, 0)),
            pl.BlockSpec((1, cpad), lambda b: (0, 0)),
        ],
        out_specs=pl.BlockSpec((TB, 1, cpad), lambda b: (b, 0, 0)),
        compiler_params=pltpu.CompilerParams(dimension_semantics=("parallel",)),
    )(patches, prep["w1p"], prep["wcl"], prep["bcl"])

    # avgpool -> view(B, -1) -> Linear  ==  the padded logits sliced to num_classes
    return out[:, 0, :num_classes]


def init_params(key, nFrames, num_classes):
    k1, k2, k3, k4, k5, k6 = jax.random.split(key, 6)
    return dict(
        w1=jax.random.normal(k1, (TAPS, FEAT), jnp.float32) * 0.1,
        b1=jax.random.normal(k2, (1, FEAT), jnp.float32) * 0.01,
        wc=jax.random.normal(k3, (nFrames * FEAT, FEAT), jnp.float32)
        * (1.0 / jnp.sqrt(nFrames * FEAT)),
        bc=jax.random.normal(k4, (1, FEAT), jnp.float32) * 0.01,
        wl=jax.random.normal(k5, (FEAT, num_classes), jnp.float32)
        * (1.0 / jnp.sqrt(FEAT)),
        bl=jax.random.normal(k6, (1, num_classes), jnp.float32) * 0.01,
    )


# Pure-JAX reference of the same forward, in the ORIGINAL op order (exact f32 MAC conv,
# per-pixel 1x1 conv, then avgpool, then Linear) — used as the correctness oracle.
def _reference(x, params):
    B, F, H, W = x.shape
    xp = jnp.pad(x.reshape(B * F, H, W).astype(jnp.float32), ((0, 0), (1, 1), (1, 1)))
    w1 = params["w1"].reshape(3, 3, FEAT)
    feats = jnp.zeros((B * F, H, W, FEAT), jnp.float32)
    for dy in range(3):
        for dx in range(3):
            feats = feats + xp[:, dy:dy + H, dx:dx + W, None] * w1[dy, dx][None, None, None, :]
    feats = feats + params["b1"][0][None, None, None, :]
    feats = jnp.maximum(feats, 0.0)
    feats = jnp.where(feats > -1e20, feats, -1e20)   # Threshold (no-op) kept in the oracle
    fcat = (
        feats.reshape(B, F, H, W, FEAT)
        .transpose(0, 2, 3, 1, 4)
        .reshape(B, H, W, F * FEAT)
    )
    y = jnp.einsum("bhwk,kc->bhwc", fcat, params["wc"]) + params["bc"][0]
    pooled = y.mean(axis=(1, 2))
    return pooled @ params["wl"] + params["bl"]


if __name__ == "__main__":
    B, F, H, W = 2, 3, 16, 16          # batch=2, nFrames=3, 16x16 pressure frames
    NUM_CLASSES = 16

    key = jax.random.PRNGKey(0)
    kx, kp = jax.random.split(key)
    x = jax.random.normal(kx, (B, F, H, W), jnp.float32)
    params = init_params(kp, F, NUM_CLASSES)

    prep = prepare_params(params)       # one-time weight prep (outside the jitted forward)
    out = touchnet_forward(x, prep, num_classes=NUM_CLASSES)
    out = jax.block_until_ready(out)

    ref = _reference(x, params)
    assert out.shape == (B, NUM_CLASSES), out.shape
    # Tolerance covers the bf16 patch/tap operands + MXU bf16 passes in the kernel vs. the
    # exact elementwise-f32 conv reference, plus the mathematically-exact pool/head reorder.
    assert jnp.allclose(out, ref, rtol=2e-2, atol=2e-2), float(jnp.max(jnp.abs(out - ref)))

    print("KERNEL_OK")
</pallas_src>

<mosaic_0001>
module attributes {stable_mosaic.version = 11 : i64} {
  func.func @_touchnet_kernel(%arg0: i32, %arg1: memref<1x768x16xbf16, #tpu.memory_space<vmem>>, %arg2: memref<16x128xbf16, #tpu.memory_space<vmem>>, %arg3: memref<384x128xf32, #tpu.memory_space<vmem>>, %arg4: memref<1x128xf32, #tpu.memory_space<vmem>>, %arg5: memref<1x1x128xf32, #tpu.memory_space<vmem>>) attributes {dimension_semantics = [#tpu.dimension_semantics<parallel>], iteration_bounds = array<i64: 2>, scalar_prefetch = 0 : i64, scratch_operands = 0 : i64, tpu.core_type = #tpu.core_type<tc>, window_params = [{transform_indices = @transform_0, window_bounds = array<i64: 1, 768, 16>}, {pipeline_mode = #tpu.pipeline_mode<synchronous>, transform_indices = @transform_1, window_bounds = array<i64: 16, 128>}, {pipeline_mode = #tpu.pipeline_mode<synchronous>, transform_indices = @transform_2, window_bounds = array<i64: 384, 128>}, {pipeline_mode = #tpu.pipeline_mode<synchronous>, transform_indices = @transform_3, window_bounds = array<i64: 1, 128>}, {transform_indices = @transform_4, window_bounds = array<i64: 1, 1, 128>}]} {
    %c0 = arith.constant 0 : index
    %c0_0 = arith.constant 0 : index
    %c0_1 = arith.constant 0 : index
    %0 = vector.load %arg1[%c0, %c0_0, %c0_1] : memref<1x768x16xbf16, #tpu.memory_space<vmem>>, vector<1x768x16xbf16>
    %1 = vector.shape_cast %0 : vector<1x768x16xbf16> to vector<768x16xbf16>
    %c0_2 = arith.constant 0 : index
    %c0_3 = arith.constant 0 : index
    %2 = vector.load %arg2[%c0_2, %c0_3] : memref<16x128xbf16, #tpu.memory_space<vmem>>, vector<16x128xbf16>
    %cst = arith.constant dense<0.000000e+00> : vector<768x128xf32>
    %3 = tpu.matmul %1, %2, %cst {dimension_numbers = #tpu.dot_dimension_numbers<[1], [0], [0], [1], [0, 0, 1, 1], [], []>} : vector<768x16xbf16>, vector<16x128xbf16>, vector<768x128xf32> -> vector<768x128xf32>
    %cst_4 = arith.constant 0.000000e+00 : f32
    %4 = vector.broadcast %cst_4 : f32 to vector<768x128xf32>
    %5 = arith.maximumf %3, %4 : vector<768x128xf32>
    %6 = vector.shape_cast %5 : vector<768x128xf32> to vector<1x3x256x128xf32>
    %7 = vector.extract_strided_slice %6 {offsets = [0, 0, 0, 0], sizes = [1, 1, 256, 128], strides = [1, 1, 1, 1]} : vector<1x3x256x128xf32> to vector<1x1x256x128xf32>
    %8 = vector.shape_cast %7 : vector<1x1x256x128xf32> to vector<1x256x128xf32>
    %cst_5 = arith.constant dense<0.000000e+00> : vector<1x128xf32>
    %9 = vector.multi_reduction <add>, %8, %cst_5 [1] : vector<1x256x128xf32> to vector<1x128xf32>
    %cst_6 = arith.constant 3.906250e-03 : f32
    %10 = vector.broadcast %cst_6 : f32 to vector<1x128xf32>
    %11 = arith.mulf %9, %10 : vector<1x128xf32>
    %12 = vector.extract_strided_slice %6 {offsets = [0, 1, 0, 0], sizes = [1, 1, 256, 128], strides = [1, 1, 1, 1]} : vector<1x3x256x128xf32> to vector<1x1x256x128xf32>
    %13 = vector.shape_cast %12 : vector<1x1x256x128xf32> to vector<1x256x128xf32>
    %cst_7 = arith.constant dense<0.000000e+00> : vector<1x128xf32>
    %14 = vector.multi_reduction <add>, %13, %cst_7 [1] : vector<1x256x128xf32> to vector<1x128xf32>
    %cst_8 = arith.constant 3.906250e-03 : f32
    %15 = vector.broadcast %cst_8 : f32 to vector<1x128xf32>
    %16 = arith.mulf %14, %15 : vector<1x128xf32>
    %17 = vector.extract_strided_slice %6 {offsets = [0, 2, 0, 0], sizes = [1, 1, 256, 128], strides = [1, 1, 1, 1]} : vector<1x3x256x128xf32> to vector<1x1x256x128xf32>
    %18 = vector.shape_cast %17 : vector<1x1x256x128xf32> to vector<1x256x128xf32>
    %cst_9 = arith.constant dense<0.000000e+00> : vector<1x128xf32>
    %19 = vector.multi_reduction <add>, %18, %cst_9 [1] : vector<1x256x128xf32> to vector<1x128xf32>
    %cst_10 = arith.constant 3.906250e-03 : f32
    %20 = vector.broadcast %cst_10 : f32 to vector<1x128xf32>
    %21 = arith.mulf %19, %20 : vector<1x128xf32>
    %22 = tpu.concatenate %11, %16, %21 in 1 : vector<1x128xf32>, vector<1x128xf32>, vector<1x128xf32> -> vector<1x384xf32>
    %c0_11 = arith.constant 0 : index
    %c0_12 = arith.constant 0 : index
    %23 = vector.load %arg3[%c0_11, %c0_12] : memref<384x128xf32, #tpu.memory_space<vmem>>, vector<384x128xf32>
    %cst_13 = arith.constant dense<0.000000e+00> : vector<1x128xf32>
    %24 = tpu.matmul %22, %23, %cst_13 {dimension_numbers = #tpu.dot_dimension_numbers<[1], [0], [0], [1], [0, 0, 1, 1], [], []>} : vector<1x384xf32>, vector<384x128xf32>, vector<1x128xf32> -> vector<1x128xf32>
    %c0_14 = arith.constant 0 : index
    %c0_15 = arith.constant 0 : index
    %25 = vector.load %arg4[%c0_14, %c0_15] : memref<1x128xf32, #tpu.memory_space<vmem>>, vector<1x128xf32>
    %26 = arith.addf %24, %25 : vector<1x128xf32>
    %c0_16 = arith.constant 0 : index
    %c0_17 = arith.constant 0 : index
    %c0_18 = arith.constant 0 : index
    %27 = vector.load %arg5[%c0_16, %c0_17, %c0_18] : memref<1x1x128xf32, #tpu.memory_space<vmem>>, vector<1x1x128xf32>
    %28 = vector.shape_cast %27 : vector<1x1x128xf32> to vector<1x128xf32>
    %29 = vector.shape_cast %26 : vector<1x128xf32> to vector<1x1x128xf32>
    tpu.vector_store %arg5[%c0_16, %c0_17, %c0_18], %29 {strides = array<i32>} : memref<1x1x128xf32, #tpu.memory_space<vmem>>, vector<1x1x128xf32>,
    return
  }
  func.func @transform_0(%arg0: i32) -> (i32, i32, i32) {
    %c0_i32 = arith.constant 0 : i32
    %c0_i32_0 = arith.constant 0 : i32
    %c0_i32_1 = arith.constant 0 : i32
    return %arg0, %c0_i32, %c0_i32_0 : i32, i32, i32
  }
  func.func @transform_1(%arg0: i32) -> (i32, i32) {
    %c0_i32 = arith.constant 0 : i32
    %c0_i32_0 = arith.constant 0 : i32
    %c0_i32_1 = arith.constant 0 : i32
    return %c0_i32, %c0_i32_0 : i32, i32
  }
  func.func @transform_2(%arg0: i32) -> (i32, i32) {
    %c0_i32 = arith.constant 0 : i32
    %c0_i32_0 = arith.constant 0 : i32
    %c0_i32_1 = arith.constant 0 : i32
    return %c0_i32, %c0_i32_0 : i32, i32
  }
  func.func @transform_3(%arg0: i32) -> (i32, i32) {
    %c0_i32 = arith.constant 0 : i32
    %c0_i32_0 = arith.constant 0 : i32
    %c0_i32_1 = arith.constant 0 : i32
    return %c0_i32, %c0_i32_0 : i32, i32
  }
  func.func @transform_4(%arg0: i32) -> (i32, i32, i32) {
    %c0_i32 = arith.constant 0 : i32
    %c0_i32_0 = arith.constant 0 : i32
    %c0_i32_1 = arith.constant 0 : i32
    return %arg0, %c0_i32, %c0_i32_0 : i32, i32, i32
  }
}

</mosaic_0001>

<bundles_post_ra>
// kernel: touchnet_forward.1
= control target key start
LH: loop header
LB: loop body
LE: loop exit
PB: predicated region body
PF: predicated region fallthrough
CT: control target
= control target key end

     0   :  { %9 = vsyncpa [#allocation3], 0  ;;  %s2219_s0 = inlined_call_operand.vmem [shape: bf16[2,768,16], index: 0, kind: input, shape index: {}]   ;;  %s2220_s1 = inlined_call_operand.vmem [shape: bf16[16,128], index: 1, kind: input, shape index: {}]   ;;  %s2221_s2 = inlined_call_operand.vmem [shape: f32[384,128], index: 2, kind: input, shape index: {}]   ;;  %s2222_s3 = inlined_call_operand.vmem [shape: f32[1,128], index: 3, kind: input, shape index: {}]   ;;  %s2223_s4 = inlined_call_operand.hbm [shape: f32[2,1,128], index: 4, kind: output, shape index: {}]  }
   0x1   :  { %11 = vsyncpa [#allocation3 + $0x1], 0  ;;  %s1754_s15 = smov 0   ;;  %s1756_s16 = smov 0  }
   0x2   :  { %s1758_s17 = smov 0   ;;  %s1760_s18 = smov 0  }
   0x3 LB: > { %s1775_s19 = sadd.s32 4294967295, %s1727_s18   ;;  %s1322_s20 = sadd.s32 4294967294, %s1727_s18   ;;  %s1727_s18 = sphi %s1760_s18, %s2235_s18   ;;  %s1723_s17 = sphi %s1758_s17, %s2234_s17   ;;  %s1719_s16 = sphi %s1756_s16, %s2233_s16   ;;  %s1715_s15 = sphi %s1754_s15, %s2232_s15  }
   0x4   : > { %s1779_s21 = sadd.s32 1, %s1727_s18   ;;  %s113_s22 = sadd.s32 1, %s1723_s17 }
   0x5   : > { %s110_s23 = ssub.s32 %s1727_s18, %s1779_s21  ;;  %p123_p0 = scmp.ne.s32.totalorder %s1723_s17, %s1719_s16 }
   0x6   : > { %p111_p1 = scmp.eq.s32.totalorder %s110_s23, 0  ;;  %p124_p2 = scmp.eq.s32.totalorder %s1775_s19, 1 }
   0x7   : > { %p129_p3 = scmp.ne.s32.totalorder %s1719_s16, %s1715_s15  ;;  %p130_p4 = scmp.eq.s32.totalorder %s1322_s20, 1 }
   0x8   : > { %s1790_s24 = scalar_select %p111_p1, %s1723_s17, %s113_s22  }
   0x9   : > { %p1792_p5 = por %p124_p2, %p123_p0  ;;  %p1796_p6 = por %p130_p4, %p129_p3 }
   0xa   : > { %p1325_p7 = scmp.ge.s32.totalorder %s1727_s18, 1  ;;  %p165_p8 = scmp.lt.s32.totalorder %s1727_s18, 3 }
   0xc   : > { %p166_p9 = pnand %p1325_p7, %p165_p8 }
   0xe   : > { %169 = sbr.rel (%p166_p9) target bundleno = 535 (0x217), region = 36 }
  0x13   : > { %v1621_v0 = vld [vmem:[%s2220_s1] sm:$0xff]  ;;  %p190_p10 = scmp.lt.s32.totalorder %s1775_s19, 1  ;;  %vm540_vm0 = vcmask 130048   ;;  %v1159_v39 = vld [vmem:[%s2221_s2 + $0x78] sm:$0xff]  ;;  %v1158_v53 = vld [vmem:[%s2221_s2 + $0x70] sm:$0xff]  ;;  %s1263_s8 = scalar_lea.hbm %s2223_s4, %s1775_s19 }
  0x14   : > { %692 = vmatpush.bf16.msra.mxu0 %v1621_v0  ;;  %1622 = vmatpush.bf16.msra.mxu1 %v1621_v0  ;;  %v1175_v52 = vld [vmem:[%s2221_s2 + $0xf8] sm:$0xff]  ;;  %s1267_s11 = sshll.u32 %s1263_s8, 4  ;;  %s1685_s22 = scalar_lea.hbm %s2223_s4, 2  ;;  %s1268_s11 = int_to_ptr.hbm [resolvable:$true] %s1267_s11 }
  0x15   : > { %s191_s29 = scalar_select %p190_p10, %s1775_s19, 1  ;;  %1623 = vmatpush.bf16.msra.mxu2 %v1621_v0  ;;  %1624 = vmatpush.bf16.msra.mxu3 %v1621_v0 }
  0x16   : > { %s1679_s13 = sshra.s32 %s1268_s11, 4  ;;  %s1680_s13 = int_to_ptr.hbm [resolvable:$true] %s1679_s13 }
  0x17   : > { %s1625_s30 = smul.u32 384, %s191_s29  ;;  %s1681_s14 = scalar_lea.hbm %s1680_s13, 1 }
  0x18   : > { %1193 = vmatpush.msrb.mxu1 %v1159_v39  ;;  %v1155_v39 = vld [vmem:[%s2221_s2 + $0x58] sm:$0xff]  ;;  %p1682_p11 = scmp.ne.s32.totalorder %s1680_s13, %s1681_s14  ;;  %p1686_p0 = scmp.lt.s32.totalorder %s1680_s13, %s2223_s4 }
  0x19   : > { %s1810_s7 = scalar_lea.vmem %s2219_s0, %s1625_s30  ;;  %1213 = vmatpush.msrb.mxu2 %v1175_v52  ;;  %v1171_v52 = vld [vmem:[%s2221_s2 + $0xd8] sm:$0xff]  ;;  %p1687_p1 = scmp.lt.s32.totalorder %s1685_s22, %s1681_s14 }
  0x1a   : > { %v1573_v1 = vld [vmem:[%s1810_s7] sm:$0xff]  ;;  %v1587_v2 = vld [vmem:[%s1810_s7 + $0x70] sm:$0xff]  ;;  %v1600_v3 = vld [vmem:[%s1810_s7 + $0xd8] sm:$0xff]  ;;  %1194 = vmatpush.msrb.mxu1 %v1158_v53  ;;  %p1683_p12 = pnand %p1682_p11, %p1792_p5 }
  0x1b   : > { %1523 = vmatmul.msk.bf16.vlgmr.msra.gmra.mxu0 %vm540_vm0, %v1573_v1  ;;  %1537 = vmatmul.msk.bf16.vlgmr.msra.gmra.mxu1 %vm540_vm0, %v1587_v2  ;;  %v1574_v4 = vld [vmem:[%s1810_s7 + $0x8] sm:$0xff]  ;;  %v1588_v5 = vld [vmem:[%s1810_s7 + $0x78] sm:$0xff]  ;;  %v1601_v6 = vld [vmem:[%s1810_s7 + $0xe0] sm:$0xff]  ;;  %p1688_p2 = por %p1687_p1, %p1686_p0 }
  0x1c   : > { %1550 = vmatmul.msk.bf16.vlgmr.msra.gmra.mxu2 %vm540_vm0, %v1600_v3  ;;  %v1575_v7 = vld [vmem:[%s1810_s7 + $0x10] sm:$0xff]  ;;  %v1589_v8 = vld [vmem:[%s1810_s7 + $0x80] sm:$0xff]  ;;  %v1602_v9 = vld [vmem:[%s1810_s7 + $0xe8] sm:$0xff]  ;;  %p1684_p13 = pneg %p1683_p12 }
  0x1d   : > { %v1612_v10 = vld [vmem:[%s1810_s7 + $0x138] sm:$0xff]  ;;  %v1590_v12 = vld [vmem:[%s1810_s7 + $0x88] sm:$0xff]  ;;  %v1603_v13 = vld [vmem:[%s1810_s7 + $0xf0] sm:$0xff] }
  0x1e   : > { %1562 = vmatmul.msk.bf16.vlgmr.msra.gmra.mxu3 %vm540_vm0, %v1612_v10  ;;  %v1576_v11 = vld [vmem:[%s1810_s7 + $0x18] sm:$0xff]  ;;  %v1613_v14 = vld [vmem:[%s1810_s7 + $0x140] sm:$0xff]  ;;  %v1591_v16 = vld [vmem:[%s1810_s7 + $0x90] sm:$0xff]  ;;  %p1689_p3 = pnand %p1688_p2, %p1684_p13 }
  0x1f   : > { %v1577_v15 = vld [vmem:[%s1810_s7 + $0x20] sm:$0xff]  ;;  %v1604_v17 = vld [vmem:[%s1810_s7 + $0xf8] sm:$0xff]  ;;  %v1614_v18 = vld [vmem:[%s1810_s7 + $0x148] sm:$0xff] }
  0x20   : > { %v1578_v19 = vld [vmem:[%s1810_s7 + $0x28] sm:$0xff]  ;;  %v1592_v20 = vld [vmem:[%s1810_s7 + $0x98] sm:$0xff]  ;;  %v1605_v21 = vld [vmem:[%s1810_s7 + $0x100] sm:$0xff] }
  0x21   : > { %v1615_v22 = vld [vmem:[%s1810_s7 + $0x150] sm:$0xff]  ;;  %v1593_v24 = vld [vmem:[%s1810_s7 + $0xa0] sm:$0xff]  ;;  %v1606_v25 = vld [vmem:[%s1810_s7 + $0x108] sm:$0xff] }
  0x22   : > { %v1579_v23 = vld [vmem:[%s1810_s7 + $0x30] sm:$0xff]  ;;  %v1616_v26 = vld [vmem:[%s1810_s7 + $0x158] sm:$0xff]  ;;  %v1594_v28 = vld [vmem:[%s1810_s7 + $0xa8] sm:$0xff] }
  0x23   : > { %v1580_v27 = vld [vmem:[%s1810_s7 + $0x38] sm:$0xff]  ;;  %v1607_v29 = vld [vmem:[%s1810_s7 + $0x110] sm:$0xff]  ;;  %v1617_v30 = vld [vmem:[%s1810_s7 + $0x160] sm:$0xff] }
  0x24   : > { %v1581_v31 = vld [vmem:[%s1810_s7 + $0x40] sm:$0xff]  ;;  %v1595_v32 = vld [vmem:[%s1810_s7 + $0xb0] sm:$0xff]  ;;  %v1608_v35 = vld [vmem:[%s1810_s7 + $0x118] sm:$0xff] }
  0x25   : > { %v1618_v43 = vld [vmem:[%s1810_s7 + $0x168] sm:$0xff]  ;;  %v1596_v46 = vld [vmem:[%s1810_s7 + $0xb8] sm:$0xff]  ;;  %v1609_v49 = vld [vmem:[%s1810_s7 + $0x120] sm:$0xff] }
  0x26   : > { %v1582_v45 = vld [vmem:[%s1810_s7 + $0x48] sm:$0xff]  ;;  %v1619_v59 = vld [vmem:[%s1810_s7 + $0x170] sm:$0xff]  ;;  %v1597_v62 = vld [vmem:[%s1810_s7 + $0xc0] sm:$0xff] }
  0x27   : > { %v1583_v61 = vld [vmem:[%s1810_s7 + $0x50] sm:$0xff]  ;;  %v1610_v1 = vld [vmem:[%s1810_s7 + $0x128] sm:$0xff]  ;;  %v1191_v53 = vld [vmem:[%s2221_s2 + $0x178] sm:$0xff] }
  0x28   : > { %v1174_v2 = vld [vmem:[%s2221_s2 + $0xf0] sm:$0xff]  ;;  %1233 = vmatpush.msrb.mxu3 %v1191_v53 }
  0x29   : > { %1214 = vmatpush.msrb.mxu2 %v1174_v2 }
  0x2b   : > { %1524 = vmatmul.msk.bf16.gmra.mxu0 %vm540_vm0, %v1574_v4  ;;  %1538 = vmatmul.msk.bf16.gmra.mxu1 %vm540_vm0, %v1588_v5  ;;  %v1157_v5 = vld [vmem:[%s2221_s2 + $0x68] sm:$0xff] }
  0x2c   : > { %1551 = vmatmul.msk.bf16.gmra.mxu2 %vm540_vm0, %v1601_v6  ;;  %1195 = vmatpush.msrb.mxu1 %v1157_v5 }
  0x2e   : > { %1563 = vmatmul.msk.bf16.gmra.mxu3 %vm540_vm0, %v1613_v14  ;;  %v1173_v14 = vld [vmem:[%s2221_s2 + $0xe8] sm:$0xff] }
  0x2f   : > { %1215 = vmatpush.msrb.mxu2 %v1173_v14 }
  0x3b   : > { %1525 = vmatmul.msk.bf16.gmra.mxu0 %vm540_vm0, %v1575_v7  ;;  %1539 = vmatmul.msk.bf16.gmra.mxu1 %vm540_vm0, %v1589_v8 }
  0x3c   : > { %1552 = vmatmul.msk.bf16.gmra.mxu2 %vm540_vm0, %v1602_v9 }
  0x3e   : > { %1564 = vmatmul.msk.bf16.gmra.mxu3 %vm540_vm0, %v1614_v18  ;;  %v1598_v18 = vld [vmem:[%s1810_s7 + $0xc8] sm:$0xff] }
  0x4b   : > { %1526 = vmatmul.msk.bf16.gmra.mxu0 %vm540_vm0, %v1576_v11  ;;  %1540 = vmatmul.msk.bf16.gmra.mxu1 %vm540_vm0, %v1590_v12 }
  0x4c   : > { %1553 = vmatmul.msk.bf16.gmra.mxu2 %vm540_vm0, %v1603_v13 }
  0x4e   : > { %1565 = vmatmul.msk.bf16.gmra.mxu3 %vm540_vm0, %v1615_v22  ;;  %v1156_v22 = vld [vmem:[%s2221_s2 + $0x60] sm:$0xff] }
  0x4f   : > { %1196 = vmatpush.msrb.mxu1 %v1156_v22 }
  0x51   : > { %1197 = vmatpush.msrb.mxu1 %v1155_v39 }
  0x5b   : > { %1527 = vmatmul.msk.bf16.gmra.mxu0 %vm540_vm0, %v1577_v15  ;;  %1541 = vmatmul.msk.bf16.gmra.mxu1 %vm540_vm0, %v1591_v16  ;;  %v1620_v15 = vld [vmem:[%s1810_s7 + $0x178] sm:$0xff] }
  0x5c   : > { %1554 = vmatmul.msk.bf16.gmra.mxu2 %vm540_vm0, %v1604_v17  ;;  %v1584_v17 = vld [vmem:[%s1810_s7 + $0x58] sm:$0xff] }
  0x5e   : > { %1566 = vmatmul.msk.bf16.gmra.mxu3 %vm540_vm0, %v1616_v26 }
  0x6b   : > { %1528 = vmatmul.msk.bf16.gmra.mxu0 %vm540_vm0, %v1578_v19  ;;  %1542 = vmatmul.msk.bf16.gmra.mxu1 %vm540_vm0, %v1592_v20 }
  0x6c   : > { %1555 = vmatmul.msk.bf16.gmra.mxu2 %vm540_vm0, %v1605_v21  ;;  %v1611_v21 = vld [vmem:[%s1810_s7 + $0x130] sm:$0xff] }
  0x6e   : > { %1567 = vmatmul.msk.bf16.gmra.mxu3 %vm540_vm0, %v1617_v30 }
  0x7b   : > { %1529 = vmatmul.msk.bf16.gmra.mxu0 %vm540_vm0, %v1579_v23  ;;  %1543 = vmatmul.msk.bf16.gmra.mxu1 %vm540_vm0, %v1593_v24 }
  0x7c   : > { %1556 = vmatmul.msk.bf16.gmra.mxu2 %vm540_vm0, %v1606_v25 }
  0x7e   : > { %1568 = vmatmul.msk.bf16.gmra.mxu3 %vm540_vm0, %v1618_v43 }
  0x8b   : > { %1530 = vmatmul.msk.bf16.gmra.mxu0 %vm540_vm0, %v1580_v27  ;;  %1544 = vmatmul.msk.bf16.gmra.mxu1 %vm540_vm0, %v1594_v28 }
  0x8c   : > { %1557 = vmatmul.msk.bf16.gmra.mxu2 %vm540_vm0, %v1607_v29 }
  0x8e   : > { %1569 = vmatmul.msk.bf16.gmra.mxu3 %vm540_vm0, %v1619_v59 }
  0x98   : > { %v694_v33 = vpop.f32.mrf.mxu0  ;;  %v1873_v34 = vpop.f32.mrf.mxu1 }
  0x99   : > { %v934_v40 = vmax.f32 %v694_v33, 0.0 }
  0x9b   : > { %1531 = vmatmul.msk.bf16.gmra.mxu0 %vm540_vm0, %v1581_v31  ;;  %1545 = vmatmul.msk.bf16.gmra.mxu1 %vm540_vm0, %v1595_v32  ;;  %v1172_v31 = vld [vmem:[%s2221_s2 + $0xe0] sm:$0xff] }
  0x9c   : > { %1558 = vmatmul.msk.bf16.gmra.mxu2 %vm540_vm0, %v1608_v35 }
  0x9d   : > { %1216 = vmatpush.msrb.mxu2 %v1172_v31 }
  0x9e   : > { %1570 = vmatmul.msk.bf16.gmra.mxu3 %vm540_vm0, %v1620_v15 }
  0x9f   : > { %v1880_v36 = vpop.f32.mrf.mxu2  ;;  %1217 = vmatpush.msrb.mxu2 %v1171_v52 }
  0xa0   : > { %v696_v37 = vpop.f32.mrf.mxu0  ;;  %v1882_v38 = vpop.f32.mrf.mxu1 }
  0xa1   : > { %v935_v41 = vmax.f32 %v696_v37, 0.0  ;;  %v1945_v28 = vpop.f32.mrf.mxu3 }
  0xa3   : > { %v1030_v42 = vadd.f32 %v935_v41, %v934_v40  ;;  %v1585_v41 = vld [vmem:[%s1810_s7 + $0x60] sm:$0xff] }
  0xa7   : > { %v1888_v44 = vpop.f32.mrf.mxu2 }
  0xa8   : > { %v699_v47 = vpop.f32.mrf.mxu0  ;;  %v1892_v48 = vpop.f32.mrf.mxu1 }
  0xa9   : > { %2226 = vst [vmem:[#allocation5_spill] sm:$0xff] %v1892_v48  ;;  %v936_v50 = vmax.f32 %v699_v47, 0.0 }
  0xab   : > { %v1031_v51 = vadd.f32 %v1030_v42, %v936_v50  ;;  %1532 = vmatmul.msk.bf16.gmra.mxu0 %vm540_vm0, %v1582_v45  ;;  %1546 = vmatmul.msk.bf16.gmra.mxu1 %vm540_vm0, %v1596_v46  ;;  %v1599_v42 = vld [vmem:[%s1810_s7 + $0xd0] sm:$0xff] }
  0xac   : > { %1559 = vmatmul.msk.bf16.gmra.mxu2 %vm540_vm0, %v1609_v49  ;;  %v1957_v49 = vpop.f32.mrf.mxu3 }
  0xaf   : > { %v1905_v54 = vpop.f32.mrf.mxu2 }
  0xb0   : > { %v701_v55 = vpop.f32.mrf.mxu0  ;;  %v1907_v56 = vpop.f32.mrf.mxu1 }
  0xb1   : > { %2227 = vst [vmem:[#allocation6_spill] sm:$0xff] %v1907_v56  ;;  %v937_v57 = vmax.f32 %v701_v55, 0.0 }
  0xb3   : > { %v1032_v58 = vadd.f32 %v1031_v51, %v937_v57 }
  0xb7   : > { %v1910_v60 = vpop.f32.mrf.mxu2 }
  0xb8   : > { %v704_v63 = vpop.f32.mrf.mxu0  ;;  %v774_v0 = vpop.f32.mrf.mxu1 }
  0xb9   : > { %v938_v3 = vmax.f32 %v704_v63, 0.0  ;;  %v966_v9 = vmax.f32 %v774_v0, 0.0  ;;  %v1969_v0 = vpop.f32.mrf.mxu3 }
  0xbb   : > { %v1033_v4 = vadd.f32 %v1032_v58, %v938_v3  ;;  %1533 = vmatmul.msk.bf16.gmra.mxu0 %vm540_vm0, %v1583_v61  ;;  %1547 = vmatmul.msk.bf16.gmra.mxu1 %vm540_vm0, %v1597_v62  ;;  %v1586_v3 = vld [vmem:[%s1810_s7 + $0x68] sm:$0xff]  ;;  %s188_s7 = sand.u32 1, %s1719_s16  }
  0xbc   : > { %1560 = vmatmul.msk.bf16.gmra.mxu2 %vm540_vm0, %v1610_v1  ;;  %v1154_v1 = vld [vmem:[%s2221_s2 + $0x50] sm:$0xff]  ;;  %s189_s9 = scalar_lea.vmem [#allocation2], %s188_s7  ;;  %s1255_s12 = scalar_lea.sflag [#allocation3], %s188_s7 }
  0xbd   : > { %1198 = vmatpush.msrb.mxu1 %v1154_v1  ;;  %s1265_s10 = sshll.u32 %s189_s9, 4  ;;  %s1266_s10 = int_to_ptr.vmem [resolvable:$true] %s1265_s10 }
  0xbf   : > { %v1925_v6 = vpop.f32.mrf.mxu2 }
  0xc0   : > { %v706_v7 = vpop.f32.mrf.mxu0  ;;  %v776_v8 = vpop.f32.mrf.mxu1 }
  0xc1   : > { %v939_v10 = vmax.f32 %v706_v7, 0.0  ;;  %v967_v11 = vmax.f32 %v776_v8, 0.0  ;;  %v1987_v14 = vpop.f32.mrf.mxu3 }
  0xc3   : > { %v1034_v12 = vadd.f32 %v1033_v4, %v939_v10  ;;  %v1068_v13 = vadd.f32 %v967_v11, %v966_v9  ;;  %v1190_v9 = vld [vmem:[%s2221_s2 + $0x170] sm:$0xff] }
  0xc4   : > { %v1170_v10 = vld [vmem:[%s2221_s2 + $0xd0] sm:$0xff]  ;;  %1234 = vmatpush.msrb.mxu3 %v1190_v9 }
  0xc5   : > { %1218 = vmatpush.msrb.mxu2 %v1170_v10 }
  0xc7   : > { %v1931_v16 = vpop.f32.mrf.mxu2 }
  0xc8   : > { %v709_v19 = vpop.f32.mrf.mxu0  ;;  %v779_v20 = vpop.f32.mrf.mxu1 }
  0xc9   : > { %v940_v23 = vmax.f32 %v709_v19, 0.0  ;;  %v968_v24 = vmax.f32 %v779_v20, 0.0 }
  0xcb   : > { %v1035_v25 = vadd.f32 %v1034_v12, %v940_v23  ;;  %v1069_v26 = vadd.f32 %v1068_v13, %v968_v24  ;;  %1534 = vmatmul.msk.bf16.gmra.mxu0 %vm540_vm0, %v1584_v17  ;;  %1548 = vmatmul.msk.bf16.gmra.mxu1 %vm540_vm0, %v1598_v18  ;;  %v1153_v13 = vld [vmem:[%s2221_s2 + $0x48] sm:$0xff] }
  0xcc   : > { %1561 = vmatmul.msk.bf16.gmra.mxu2 %vm540_vm0, %v1611_v21  ;;  %1199 = vmatpush.msrb.mxu1 %v1153_v13  ;;  %v1189_v21 = vld [vmem:[%s2221_s2 + $0x168] sm:$0xff] }
  0xcd   : > { %1235 = vmatpush.msrb.mxu3 %v1189_v21  ;;  %v1169_v24 = vld [vmem:[%s2221_s2 + $0xc8] sm:$0xff]  ;;  %v1150_v21 = vld [vmem:[%s2221_s2 + $0x30] sm:$0xff] }
  0xce   : > { %1219 = vmatpush.msrb.mxu2 %v1169_v24 }
  0xcf   : > { %v1943_v27 = vpop.f32.mrf.mxu2 }
  0xd0   : > { %v711_v29 = vpop.f32.mrf.mxu0  ;;  %v781_v30 = vpop.f32.mrf.mxu1 }
  0xd1   : > { %v941_v32 = vmax.f32 %v711_v29, 0.0  ;;  %v969_v33 = vmax.f32 %v781_v30, 0.0 }
  0xd3   : > { %v1036_v35 = vadd.f32 %v1035_v25, %v941_v32  ;;  %v1070_v37 = vadd.f32 %v1069_v26, %v969_v33  ;;  %v1995_v26 = vpop.f32.mrf.mxu3 }
  0xd7   : > { %v1953_v40 = vpop.f32.mrf.mxu2 }
  0xd8   : > { %v714_v43 = vpop.f32.mrf.mxu0  ;;  %v784_v45 = vpop.f32.mrf.mxu1 }
  0xd9   : > { %v942_v46 = vmax.f32 %v714_v43, 0.0  ;;  %v970_v47 = vmax.f32 %v784_v45, 0.0  ;;  %v1152_v43 = vld [vmem:[%s2221_s2 + $0x40] sm:$0xff] }
  0xda   : > { %1200 = vmatpush.msrb.mxu1 %v1152_v43  ;;  %v1183_v43 = vld [vmem:[%s2221_s2 + $0x138] sm:$0xff] }
  0xdb   : > { %v1037_v50 = vadd.f32 %v1036_v35, %v942_v46  ;;  %v1071_v51 = vadd.f32 %v1070_v37, %v970_v47  ;;  %1535 = vmatmul.msk.bf16.gmra.mxu0 %vm540_vm0, %v1585_v41  ;;  %1549 = vmatmul.msk.bf16.gmra.mxu1 %vm540_vm0, %v1599_v42  ;;  %v1188_v42 = vld [vmem:[%s2221_s2 + $0x160] sm:$0xff]  ;;  %v2003_v53 = vpop.f32.mrf.mxu3 }
  0xdc   : > { %1236 = vmatpush.msrb.mxu3 %v1188_v42  ;;  %v1165_v42 = vld [vmem:[%s2221_s2 + $0xa8] sm:$0xff] }
  0xdf   : > { %v1967_v55 = vpop.f32.mrf.mxu2 }
  0xe0   : > { %v716_v57 = vpop.f32.mrf.mxu0  ;;  %v786_v58 = vpop.f32.mrf.mxu1 }
  0xe1   : > { %v943_v59 = vmax.f32 %v716_v57, 0.0  ;;  %v971_v61 = vmax.f32 %v786_v58, 0.0  ;;  %v1168_v58 = vld [vmem:[%s2221_s2 + $0xc0] sm:$0xff] }
  0xe2   : > { %1220 = vmatpush.msrb.mxu2 %v1168_v58 }
  0xe3   : > { %v1038_v62 = vadd.f32 %v1037_v50, %v943_v59  ;;  %v1072_v63 = vadd.f32 %v1071_v51, %v971_v61  ;;  %v2020_v10 = vpop.f32.mrf.mxu3 }
  0xe7   : > { %v1974_v2 = vpop.f32.mrf.mxu2 }
  0xe8   : > { %2228 = vst [vmem:[#allocation7_spill] sm:$0xff] %v1974_v2  ;;  %v719_v4 = vpop.f32.mrf.mxu0  ;;  %v789_v5 = vpop.f32.mrf.mxu1 }
  0xe9   : > { %v944_v7 = vmax.f32 %v719_v4, 0.0  ;;  %v972_v8 = vmax.f32 %v789_v5, 0.0 }
  0xeb   : > { %v1039_v11 = vadd.f32 %v1038_v62, %v944_v7  ;;  %v1073_v12 = vadd.f32 %v1072_v63, %v972_v8  ;;  %1536 = vmatmul.msk.bf16.gmra.mxu0 %vm540_vm0, %v1586_v3  ;;  %v1187_v62 = vld [vmem:[%s2221_s2 + $0x158] sm:$0xff] }
  0xec   : > { %1237 = vmatpush.msrb.mxu3 %v1187_v62  ;;  %v1151_v7 = vld [vmem:[%s2221_s2 + $0x38] sm:$0xff]  ;;  %v1164_v62 = vld [vmem:[%s2221_s2 + $0xa0] sm:$0xff] }
  0xed   : > { %1201 = vmatpush.msrb.mxu1 %v1151_v7 }
  0xef   : > { %v854_v15 = vpop.f32.mrf.mxu2  ;;  %1202 = vmatpush.msrb.mxu1 %v1150_v21 }
  0xf0   : > { %v721_v17 = vpop.f32.mrf.mxu0  ;;  %v791_v18 = vpop.f32.mrf.mxu1  ;;  %v998_v29 = vmax.f32 %v854_v15, 0.0 }
  0xf1   : > { %v945_v19 = vmax.f32 %v721_v17, 0.0  ;;  %v973_v20 = vmax.f32 %v791_v18, 0.0 }
  0xf3   : > { %v1040_v22 = vadd.f32 %v1039_v11, %v945_v19  ;;  %v1074_v23 = vadd.f32 %v1073_v12, %v973_v20  ;;  %v1186_v11 = vld [vmem:[%s2221_s2 + $0x150] sm:$0xff]  ;;  %v1167_v12 = vld [vmem:[%s2221_s2 + $0xb8] sm:$0xff]  ;;  %v1185_v20 = vld [vmem:[%s2221_s2 + $0x148] sm:$0xff] }
  0xf4   : > { %1238 = vmatpush.msrb.mxu3 %v1186_v11  ;;  %1221 = vmatpush.msrb.mxu2 %v1167_v12 }
  0xf6   : > { %1239 = vmatpush.msrb.mxu3 %v1185_v20 }
  0xf7   : > { %v856_v25 = vpop.f32.mrf.mxu2 }
  0xf8   : > { %v999_v30 = vmax.f32 %v856_v25, 0.0  ;;  %v724_v31 = vpop.f32.mrf.mxu0  ;;  %v794_v32 = vpop.f32.mrf.mxu1 }
  0xf9   : > { %v946_v33 = vmax.f32 %v724_v31, 0.0  ;;  %v974_v35 = vmax.f32 %v794_v32, 0.0  ;;  %v1184_v32 = vld [vmem:[%s2221_s2 + $0x140] sm:$0xff] }
  0xfa   : > { %v1106_v37 = vadd.f32 %v999_v30, %v998_v29  ;;  %v1166_v30 = vld [vmem:[%s2221_s2 + $0xb0] sm:$0xff]  ;;  %1240 = vmatpush.msrb.mxu3 %v1184_v32 }
  0xfb   : > { %v1041_v39 = vadd.f32 %v1040_v22, %v946_v33  ;;  %v1075_v41 = vadd.f32 %v1074_v23, %v974_v35  ;;  %v2036_v22 = vpop.f32.mrf.mxu3  ;;  %1222 = vmatpush.msrb.mxu2 %v1166_v30 }
  0xfc   : > { %1241 = vmatpush.msrb.mxu3 %v1183_v43 }
  0xfd   : > { %1223 = vmatpush.msrb.mxu2 %v1165_v42  ;;  %v1181_v42 = vld [vmem:[%s2221_s2 + $0x128] sm:$0xff] }
  0xff   : > { %v859_v45 = vpop.f32.mrf.mxu2  ;;  %1224 = vmatpush.msrb.mxu2 %v1164_v62 }
 0x100   : > { %v1000_v46 = vmax.f32 %v859_v45, 0.0  ;;  %v726_v47 = vpop.f32.mrf.mxu0  ;;  %v796_v50 = vpop.f32.mrf.mxu1 }
 0x101   : > { %v947_v51 = vmax.f32 %v726_v47, 0.0  ;;  %v975_v52 = vmax.f32 %v796_v50, 0.0 }
 0x102   : > { %v2005_v57 = vadd.f32 %v1106_v37, %v1000_v46 }
 0x103   : > { %v1042_v59 = vadd.f32 %v1041_v39, %v947_v51  ;;  %v1076_v61 = vadd.f32 %v1075_v41, %v975_v52  ;;  %v2048_v35 = vpop.f32.mrf.mxu3  ;;  %v1149_v41 = vld [vmem:[%s2221_s2 + $0x28] sm:$0xff] }
 0x104   : > { %1203 = vmatpush.msrb.mxu1 %v1149_v41 }
 0x107   : > { %v2013_v63 = vpop.f32.mrf.mxu2 }
 0x108   : > { %v729_v1 = vpop.f32.mrf.mxu0  ;;  %v799_v3 = vpop.f32.mrf.mxu1 }
 0x109   : > { %v948_v4 = vmax.f32 %v729_v1, 0.0  ;;  %v976_v5 = vmax.f32 %v799_v3, 0.0 }
 0x10b   : > { %v1043_v8 = vadd.f32 %v1042_v59, %v948_v4  ;;  %v2018_v9 = vadd.f32 %v1076_v61, %v976_v5  ;;  %v2063_v50 = vpop.f32.mrf.mxu3  ;;  %v1148_v59 = vld [vmem:[%s2221_s2 + $0x20] sm:$0xff]  ;;  %v1182_v61 = vld [vmem:[%s2221_s2 + $0x130] sm:$0xff] }
 0x10c   : > { %1204 = vmatpush.msrb.mxu1 %v1148_v59  ;;  %1242 = vmatpush.msrb.mxu3 %v1182_v61 }
 0x10e   : > { %1243 = vmatpush.msrb.mxu3 %v1181_v42 }
 0x10f   : > { %v864_v13 = vpop.f32.mrf.mxu2 }
 0x110   : > { %v731_v15 = vpop.f32.mrf.mxu0  ;;  %v2028_v17 = vpop.f32.mrf.mxu1 }
 0x111   : > { %v949_v18 = vmax.f32 %v731_v15, 0.0  ;;  %v1001_v15 = vmax.f32 %v2013_v63, 0.0  ;;  %v977_v63 = vmax.f32 %v2028_v17, 0.0 }
 0x113   : > { %v1044_v19 = vadd.f32 %v1043_v8, %v949_v18  ;;  %v2076_v1 = vpop.f32.mrf.mxu3  ;;  %v1002_v18 = vmax.f32 %v864_v13, 0.0 }
 0x117   : > { %v866_v23 = vpop.f32.mrf.mxu2 }
 0x118   : > { %v734_v24 = vpop.f32.mrf.mxu0  ;;  %v2038_v25 = vpop.f32.mrf.mxu1  ;;  %v1003_v20 = vmax.f32 %v866_v23, 0.0 }
 0x119   : > { %v950_v29 = vmax.f32 %v734_v24, 0.0  ;;  %v978_v23 = vmax.f32 %v2038_v25, 0.0 }
 0x11b   : > { %v2043_v31 = vadd.f32 %v1044_v19, %v950_v29  ;;  %v2080_v7 = vpop.f32.mrf.mxu3  ;;  %v1108_v19 = vadd.f32 %v2005_v57, %v1001_v15 }
 0x11d   : > { %v1109_v29 = vadd.f32 %v1108_v19, %v1002_v18 }
 0x11f   : > { %v869_v33 = vpop.f32.mrf.mxu2  ;;  %v1110_v43 = vadd.f32 %v1109_v29, %v1003_v20 }
 0x120   : > { %v2050_v37 = vpop.f32.mrf.mxu0  ;;  %v806_v39 = vpop.f32.mrf.mxu1  ;;  %v1004_v30 = vmax.f32 %v869_v33, 0.0  ;;  %v1078_v33 = vadd.f32 %v2018_v9, %v977_v63 }
 0x121   : > { %v979_v15 = vmax.f32 %v806_v39, 0.0 }
 0x122   : > { %v1111_v13 = vadd.f32 %v1110_v43, %v1004_v30  ;;  %v1079_v42 = vadd.f32 %v1078_v33, %v978_v23  ;;  %v1162_v33 = vld [vmem:[%s2221_s2 + $0x90] sm:$0xff] }
 0x123   : > { %v2086_v24 = vpop.f32.mrf.mxu3 }
 0x127   : > { %v871_v45 = vpop.f32.mrf.mxu2 }
 0x128   : > { %v2061_v46 = vpop.f32.mrf.mxu0  ;;  %v809_v47 = vpop.f32.mrf.mxu1  ;;  %v1005_v59 = vmax.f32 %v871_v45, 0.0 }
 0x129   : > { %v980_v20 = vmax.f32 %v809_v47, 0.0  ;;  %v1147_v47 = vld [vmem:[%s2221_s2 + $0x18] sm:$0xff] }
 0x12a   : > { %v1112_v61 = vadd.f32 %v1111_v13, %v1005_v59  ;;  %1205 = vmatpush.msrb.mxu1 %v1147_v47 }
 0x12b   : > { %v2098_v45 = vpop.f32.mrf.mxu3 }
 0x12f   : > { %v874_v51 = vpop.f32.mrf.mxu2 }
 0x130   : > { %v2065_v52 = vpop.f32.mrf.mxu0  ;;  %v811_v58 = vpop.f32.mrf.mxu1  ;;  %v1006_v57 = vmax.f32 %v874_v51, 0.0  ;;  %v1080_v51 = vadd.f32 %v1079_v42, %v979_v15  ;;  %v1146_v15 = vld [vmem:[%s2221_s2 + $0x10] sm:$0xff] }
 0x131   : > { %v981_v30 = vmax.f32 %v811_v58, 0.0  ;;  %v1180_v58 = vld [vmem:[%s2221_s2 + $0x120] sm:$0xff]  ;;  %1206 = vmatpush.msrb.mxu1 %v1146_v15 }
 0x132   : > { %v1113_v19 = vadd.f32 %v1112_v61, %v1006_v57  ;;  %1244 = vmatpush.msrb.mxu3 %v1180_v58  ;;  %v1178_v58 = vld [vmem:[%s2221_s2 + $0x110] sm:$0xff]  ;;  %v1176_v15 = vld [vmem:[%s2221_s2 + $0x100] sm:$0xff] }
 0x137   : > { %v876_v3 = vpop.f32.mrf.mxu2 }
 0x138   : > { %v2078_v4 = vpop.f32.mrf.mxu0  ;;  %v814_v5 = vpop.f32.mrf.mxu1  ;;  %v1007_v62 = vmax.f32 %v876_v3, 0.0  ;;  %v1081_v3 = vadd.f32 %v1080_v51, %v980_v20 }
 0x139   : > { %v982_v59 = vmax.f32 %v814_v5, 0.0  ;;  %v2122_v20 = vpop.f32.mrf.mxu3 }
 0x13a   : > { %v1114_v17 = vadd.f32 %v1113_v19, %v1007_v62  ;;  %v1082_v39 = vadd.f32 %v1081_v3, %v981_v30 }
 0x13c   : > { %v1083_v5 = vadd.f32 %v1082_v39, %v982_v59  ;;  %v1015_v59 = vmax.f32 %v1987_v14, 0.0 }
 0x13f   : > { %v879_v8 = vpop.f32.mrf.mxu2 }
 0x140   : > { %v2082_v11 = vpop.f32.mrf.mxu0  ;;  %v816_v12 = vpop.f32.mrf.mxu1  ;;  %v1008_v56 = vmax.f32 %v879_v8, 0.0 }
 0x141   : > { %v983_v63 = vmax.f32 %v816_v12, 0.0 }
 0x142   : > { %v1115_v25 = vadd.f32 %v1114_v17, %v1008_v56  ;;  %v1163_v56 = vld [vmem:[%s2221_s2 + $0x98] sm:$0xff] }
 0x143   : > { %1225 = vmatpush.msrb.mxu2 %v1163_v56  ;;  %v1084_v19 = vadd.f32 %v1083_v5, %v983_v63  ;;  %v1017_v56 = vmax.f32 %v2003_v53, 0.0  ;;  %v2146_v53 = vpop.f32.mrf.mxu3 }
 0x145   : > { %1226 = vmatpush.msrb.mxu2 %v1162_v33  ;;  %v1018_v33 = vmax.f32 %v2020_v10, 0.0  ;;  %v991_v10 = vmax.f32 %v1910_v60, 0.0 }
 0x147   : > { %v881_v21 = vpop.f32.mrf.mxu2 }
 0x148   : > { %v2088_v32 = vpop.f32.mrf.mxu0  ;;  %v819_v41 = vpop.f32.mrf.mxu1  ;;  %v1009_v29 = vmax.f32 %v881_v21, 0.0  ;;  %v1012_v21 = vmax.f32 %v1945_v28, 0.0  ;;  %v1013_v28 = vmax.f32 %v1957_v49, 0.0 }
 0x149   : > { %v984_v12 = vmax.f32 %v819_v41, 0.0  ;;  %v951_v41 = vmax.f32 %v2050_v37, 0.0  ;;  %v953_v37 = vmax.f32 %v2065_v52, 0.0 }
 0x14a   : > { %v1116_v9 = vadd.f32 %v1115_v25, %v1009_v29  ;;  %v952_v29 = vmax.f32 %v2061_v46, 0.0  ;;  %v1014_v25 = vmax.f32 %v1969_v0, 0.0  ;;  %v988_v0 = vmax.f32 %v1880_v36, 0.0 }
 0x14b   : > { %v1085_v51 = vadd.f32 %v1084_v19, %v984_v12  ;;  %v1046_v3 = vadd.f32 %v2043_v31, %v951_v41  ;;  %v955_v31 = vmax.f32 %v2082_v11, 0.0  ;;  %v989_v36 = vmax.f32 %v1888_v44, 0.0  ;;  %v1144_v44 = vld [vmem:[%s2221_s2] sm:$0xff] }
 0x14c   : > { %v956_v11 = vmax.f32 %v2088_v32, 0.0 }
 0x14d   : > { %v1047_v49 = vadd.f32 %v1046_v3, %v952_v29 }
 0x14f   : > { %v884_v18 = vpop.f32.mrf.mxu2  ;;  %v1048_v47 = vadd.f32 %v1047_v49, %v953_v37 }
 0x150   : > { %v2096_v48 = vpop.f32.mrf.mxu0  ;;  %v821_v2 = vpop.f32.mrf.mxu1  ;;  %v1010_v43 = vmax.f32 %v884_v18, 0.0  ;;  %v1179_v18 = vld [vmem:[%s2221_s2 + $0x118] sm:$0xff] }
 0x151   : > { %v985_v42 = vmax.f32 %v821_v2, 0.0  ;;  %1245 = vmatpush.msrb.mxu3 %v1179_v18  ;;  %v990_v18 = vmax.f32 %v1905_v54, 0.0  ;;  %v957_v19 = vmax.f32 %v2096_v48, 0.0  ;;  %v1020_v54 = vmax.f32 %v2048_v35, 0.0 }
 0x152   : > { %v1117_v8 = vadd.f32 %v1116_v9, %v1010_v43  ;;  %v992_v48 = vmax.f32 %v1925_v6, 0.0  ;;  %v1023_v6 = vmax.f32 %v2080_v7, 0.0  ;;  %v963_v7 = vmax.f32 %v1882_v38, 0.0 }
 0x153   : > { %v1086_v2 = vadd.f32 %v1085_v51, %v985_v42  ;;  %1246 = vmatpush.msrb.mxu3 %v1178_v58  ;;  %v1025_v58 = vmax.f32 %v2098_v45, 0.0 }
 0x157   : > { %v886_v13 = vpop.f32.mrf.mxu2 }
 0x158   : > { %v1011_v57 = vmax.f32 %v886_v13, 0.0  ;;  %v2100_v61 = vpop.f32.mrf.mxu0  ;;  %v824_v23 = vpop.f32.mrf.mxu1  ;;  %v954_v13 = vmax.f32 %v2078_v4, 0.0  ;;  %v1161_v4 = vld [vmem:[%s2221_s2 + $0x88] sm:$0xff] }
 0x159   : > { %v986_v30 = vmax.f32 %v824_v23, 0.0  ;;  %1227 = vmatpush.msrb.mxu2 %v1161_v4 }
 0x15a   : > { %v1118_v62 = vadd.f32 %v1117_v8, %v1011_v57  ;;  %v1016_v57 = vmax.f32 %v1995_v26, 0.0  ;;  %v1145_v26 = vld [vmem:[%s2221_s2 + $0x8] sm:$0xff]  ;;  %v1049_v5 = vadd.f32 %v1048_v47, %v954_v13 }
 0x15b   : > { %v1087_v8 = vadd.f32 %v1086_v2, %v986_v30  ;;  %1207 = vmatpush.msrb.mxu1 %v1145_v26  ;;  %v958_v30 = vmax.f32 %v2100_v61, 0.0  ;;  %v1022_v61 = vmax.f32 %v2076_v1, 0.0  ;;  %v962_v1 = vmax.f32 %v1873_v34, 0.0  ;;  %v2229_v26 = vld [vmem:[#allocation7_spill] sm:$0xff] }
 0x15c   : > { %v1119_v17 = vadd.f32 %v1118_v62, %v1012_v21  ;;  %v1177_v21 = vld [vmem:[%s2221_s2 + $0x108] sm:$0xff]  ;;  %v1160_v62 = vld [vmem:[%s2221_s2 + $0x80] sm:$0xff]  ;;  %v1050_v41 = vadd.f32 %v1049_v5, %v955_v31  ;;  %v1024_v31 = vmax.f32 %v2086_v24, 0.0 }
 0x15d   : > { %1247 = vmatpush.msrb.mxu3 %v1177_v21  ;;  %1228 = vmatpush.msrb.mxu2 %v1160_v62  ;;  %v2230_v24 = vld [vmem:[#allocation5_spill] sm:$0xff] }
 0x15e   : > { %v1120_v43 = vadd.f32 %v1119_v17, %v1013_v28  ;;  %v1019_v28 = vmax.f32 %v2036_v22, 0.0  ;;  %1208 = vmatpush.msrb.mxu1 %v1144_v44  ;;  %v1051_v51 = vadd.f32 %v1050_v41, %v956_v11  ;;  %v1021_v22 = vmax.f32 %v2063_v50, 0.0 }
 0x15f   : > { %1248 = vmatpush.msrb.mxu3 %v1176_v15  ;;  %v995_v50 = vmax.f32 %v1953_v40, 0.0  ;;  %v1026_v11 = vmax.f32 %v2122_v20, 0.0  ;;  %v964_v21 = vmax.f32 %v2230_v24, 0.0 }
 0x160   : > { %v1121_v9 = vadd.f32 %v1120_v43, %v1014_v25  ;;  %v756_v39 = vpop.f32.mrf.mxu0  ;;  %v826_v63 = vpop.f32.mrf.mxu1  ;;  %v1052_v3 = vadd.f32 %v1051_v51, %v957_v19 }
 0x161   : > { %v987_v46 = vmax.f32 %v826_v63, 0.0  ;;  %v959_v37 = vmax.f32 %v756_v39, 0.0 }
 0x162   : > { %v1122_v23 = vadd.f32 %v1121_v9, %v1015_v59  ;;  %v993_v9 = vmax.f32 %v1931_v16, 0.0  ;;  %v1053_v63 = vadd.f32 %v1052_v3, %v958_v30 }
 0x163   : > { %v1088_v52 = vadd.f32 %v1087_v8, %v987_v46  ;;  %v994_v8 = vmax.f32 %v1943_v27, 0.0 }
 0x164   : > { %v1123_v14 = vadd.f32 %v1122_v23, %v1016_v57  ;;  %v1054_v35 = vadd.f32 %v1053_v63, %v959_v37  ;;  %v929_v57 = vpop.f32.mrf.mxu3 }
 0x165   : > { %v1089_v12 = vadd.f32 %v1088_v52, %v988_v0  ;;  %v1028_v41 = vmax.f32 %v929_v57, 0.0 }
 0x166   : > { %v1124_v32 = vadd.f32 %v1123_v14, %v1017_v56  ;;  %v996_v56 = vmax.f32 %v1967_v55, 0.0  ;;  %v1027_v55 = vmax.f32 %v2146_v53, 0.0 }
 0x167   : > { %v1090_v42 = vadd.f32 %v1089_v12, %v989_v36  ;;  %v997_v36 = vmax.f32 %v2229_v26, 0.0 }
 0x168   : > { %v1125_v17 = vadd.f32 %v1124_v32, %v1018_v33  ;;  %v759_v29 = vpop.f32.mrf.mxu0  ;;  %v2231_v33 = vld [vmem:[#allocation6_spill] sm:$0xff] }
 0x169   : > { %v1091_v25 = vadd.f32 %v1090_v42, %v990_v18  ;;  %v960_v49 = vmax.f32 %v759_v29, 0.0  ;;  %v965_v32 = vmax.f32 %v2231_v33, 0.0 }
 0x16a   : > { %v1126_v43 = vadd.f32 %v1125_v17, %v1019_v28 }
 0x16b   : > { %v1092_v2 = vadd.f32 %v1091_v25, %v991_v10  ;;  %v1055_v47 = vadd.f32 %v1054_v35, %v960_v49 }
 0x16c   : > { %v1127_v59 = vadd.f32 %v1126_v43, %v1020_v54  ;;  %v931_v15 = vpop.f32.mrf.mxu3 }
 0x16d   : > { %v1093_v60 = vadd.f32 %v1092_v2, %v992_v48  ;;  %v1029_v17 = vmax.f32 %v931_v15, 0.0 }
 0x16e   : > { %v1128_v13 = vadd.f32 %v1127_v59, %v1021_v22 }
 0x16f   : > { %v1094_v46 = vadd.f32 %v1093_v60, %v993_v9 }
 0x170   : > { %v1129_v39 = vadd.f32 %v1128_v13, %v1022_v61  ;;  %v761_v23 = vpop.f32.mrf.mxu0  ;;  %v1192_v13 = vld [vmem:[%s2222_s3] sm:$0x1] }
 0x171   : > { %v1095_v0 = vadd.f32 %v1094_v46, %v994_v8  ;;  %v961_v16 = vmax.f32 %v761_v23, 0.0 }
 0x172   : > { %v1130_v52 = vadd.f32 %v1129_v39, %v1023_v6 }
 0x173   : > { %v1056_v27 = vadd.f32 %v1055_v47, %v961_v16  ;;  %v1096_v14 = vadd.f32 %v1095_v0, %v995_v50 }
 0x174   : > { %v1131_v4 = vadd.f32 %v1130_v52, %v1024_v31 }
 0x175   : > { %v1057_v40 = vadd.f32 %v1056_v27, %v962_v1  ;;  %v1097_v5 = vadd.f32 %v1096_v14, %v996_v56 }
 0x176   : > { %v1132_v12 = vadd.f32 %v1131_v4, %v1025_v58 }
 0x177   : > { %v1058_v62 = vadd.f32 %v1057_v40, %v963_v7  ;;  %v1098_v34 = vadd.f32 %v1097_v5, %v997_v36 }
 0x178   : > { %v1133_v44 = vadd.f32 %v1132_v12, %v1026_v11 }
 0x179   : > { %v1059_v45 = vadd.f32 %v1058_v62, %v964_v21  ;;  %v1099_v18 = vrot.slane %v1098_v34, 4 }
 0x17a   : > { %v1134_v38 = vadd.f32 %v1133_v44, %v1027_v55 }
 0x17b   : > { %v1060_v19 = vadd.f32 %v1059_v45, %v965_v32  ;;  %v1100_v42 = vadd.f32 %v1099_v18, %v1098_v34 }
 0x17c   : > { %v1135_v28 = vadd.f32 %v1134_v38, %v1028_v41 }
 0x17d   : > { %v1061_v20 = vrot.slane %v1060_v19, 4  ;;  %v1101_v29 = vrot.slane %v1100_v42, 2 }
 0x17e   : > { %v1136_v10 = vadd.f32 %v1135_v28, %v1029_v17 }
 0x17f   : > { %v1062_v51 = vadd.f32 %v1061_v20, %v1060_v19  ;;  %v1102_v30 = vadd.f32 %v1101_v29, %v1100_v42 }
 0x180   : > { %v1137_v25 = vrot.slane %v1136_v10, 4 }
 0x181   : > { %v1103_v54 = vrot.slane %v1102_v30, 1  ;;  %v1063_v43 = vrot.slane %v1062_v51, 2 }
 0x182   : > { %v1138_v53 = vadd.f32 %v1137_v25, %v1136_v10 }
 0x183   : > { %v1104_v48 = vadd.f32 %v1103_v54, %v1102_v30  ;;  %v1064_v3 = vadd.f32 %v1063_v43, %v1062_v51 }
 0x184   : > { %v1139_v37 = vrot.slane %v1138_v53, 2 }
 0x185   : > { %v1105_v2 = vmul.f32 0.00390625, %v1104_v48  ;;  %v1065_v22 = vrot.slane %v1064_v3, 1 }
 0x186   : > { %v1140_v59 = vadd.f32 %v1139_v37, %v1138_v53 }
 0x187   : > { %1229 = vmatmul.f32.vlgmr.msrb.gmra.mxu2 %v1105_v2  ;;  %v1066_v9 = vadd.f32 %v1065_v22, %v1064_v3 }
 0x188   : > { %v1141_v63 = vrot.slane %v1140_v59, 1 }
 0x189   : > { %v1067_v60 = vmul.f32 0.00390625, %v1066_v9 }
 0x18a   : > { %v1142_v49 = vadd.f32 %v1141_v63, %v1140_v59 }
 0x18b   : > { %1209 = vmatmul.f32.vlgmr.msrb.gmra.mxu1 %v1067_v60 }
 0x18c   : > { %v1143_v61 = vmul.f32 0.00390625, %v1142_v49 }
 0x18e   : > { %1249 = vmatmul.f32.vlgmr.msrb.gmra.mxu3 %v1143_v61 }
 0x208   : > { %v1210_v8 = vpop.f32.mrf.mxu1 }
 0x209   : > { %v1211_v35 = vadd.f32 %v1210_v8, %v1192_v13 }
 0x20a   : > { %v1230_v46 = vpop.f32.mrf.mxu2 }
 0x20b   : > { %v1231_v57 = vadd.f32 %v1230_v46, %v1211_v35 }
 0x211   : > { %v1250_v6 = vpop.f32.mrf.mxu3 }
 0x212   : > { %v1251_v39 = vadd.f32 %v1250_v6, %v1231_v57 }
 0x214   : > { %1253 = vst [vmem:[%s189_s9] sm:$0x1] %v1251_v39 }
 0x215   : > { %1692 = shalt.err (!%p1689_p3)
}
 0x216   : > { %1626 = dma.vmem_to_hbm [thread:$0]  (%p1792_p5), %s1266_s10, 16, %s1268_s11, %s1255_s12  }
 0x217 PF: > { %p1632_p4 = scmp.ge.s32.totalorder %s1727_s18, 2  ;;  %s1279_s28 = sand.u32 1, %s1715_s15  }
 0x218   : > { %s1280_s29 = scalar_lea.sflag [#allocation3], %s1279_s28 }
 0x219   : > { %p1629_p7 = pnand %p1632_p4, %p1796_p6 }
 0x21b   : > { %p1630_p8 = pneg %p1629_p7 }
 0x21d   : > { %1710 = dma.done.wait (%p1630_p8), %s1280_s29, 16  }
 0x21e   : > { %1712 = vsyncadd (%p1630_p8), %s1280_s29, 4294967280  ;;  %p14_p9 = scmp.ge.s32.totalorder %s1779_s21, 4   ;;  %s2232_s15 = smov %s1719_s16 }
 0x21f   : > { %s2233_s16 = smov %s1723_s17  ;;  %s2234_s17 = smov %s1790_s24 }
 0x220   : > { %s2235_s18 = smov %s1779_s21  ;;  %16 = sbr.rel (!%p14_p9) target bundleno = 3 (0x3), region = 71 }
 0x225   :  { %1285 = vsyncpa [#allocation3], 1 }
 0x226   :  { %1287 = vsyncpa [#allocation3 + $0x1], 1 }

</bundles_post_ra>
